<compile_context>
chip_gen: v7x
topology: tpu7x:2x2x1
jax: 0.10.0
libtpu: 0.0.40
codegen_flags: <defaults>
</compile_context>

<pallas_src>
import functools
import math

import jax
import jax.numpy as jnp
from jax.experimental import pallas as pl
from jax.experimental.pallas import tpu as pltpu


def _rmsnorm_kernel(x_ref, w_ref, o_ref, *, eps, sub_rows):
    block_rows = x_ref.shape[0]
    n_sub = block_rows // sub_rows          # static
    w = w_ref[...]                          # (1, hidden); hoisted out of the loop

    def body(s, carry):
        r = pl.multiple_of(s * sub_rows, sub_rows)
        x = x_ref[pl.ds(r, sub_rows), :].astype(jnp.float32)
        var = jnp.mean(x * x, axis=-1, keepdims=True)
        inv = jax.lax.rsqrt(var + eps)      # EUP slot; essentially free
        # PyTorch parity: downcast to the input dtype, then scale by weight
        # with normal promotion (f32 weight * bf16 act -> f32 out).
        y = (x * inv).astype(x_ref.dtype)
        o_ref[pl.ds(r, sub_rows), :] = (w * y).astype(o_ref.dtype)
        return carry

    jax.lax.fori_loop(0, n_sub, body, 0)


def _round_up(n, m):
    return ((n + m - 1) // m) * m


def _round_down_to(n, m):
    return max(m, (n // m) * m)


def _vmem_caps():
    """Returns (tiling_budget_bytes, vmem_limit_bytes), generation-aware."""
    cap = None
    try:
        cap = getattr(pltpu.get_tpu_info(), "vmem_capacity_bytes", None)
    except Exception:
        cap = None
    if cap is None:
        cap = 64 * 1024 * 1024                      # conservative: v7x per-TC VMEM
    if cap <= 64 * 1024 * 1024:                     # v7x
        return 20 * 1024 * 1024, 40 * 1024 * 1024
    return 32 * 1024 * 1024, 64 * 1024 * 1024       # v5e / v6e (128 MiB physical)


def _pick_block_rows(rows, hidden, in_bytes, out_bytes, pack, budget_bytes):
    """Largest sublane-aligned row tile that keeps the pipeline in budget."""
    # Double-buffered streamed in+out, plus ~1x f32/row slack for in-kernel temps.
    per_row = 2 * hidden * (in_bytes + out_bytes) + hidden * 4
    fit = _round_down_to(budget_bytes // max(1, per_row), pack)
    # Cap the input tile at ~16 MiB per step (per-step overhead amortizes well
    # above ~8 MiB; no need to go bigger).
    tile_cap = _round_down_to((16 * 1024 * 1024) // (hidden * in_bytes), pack)
    br = min(fit, tile_cap)
    # Keep >= ~4 grid steps when rows permit (megacore sharding + DMA overlap).
    br = min(br, _round_up(max(1, -(-rows // 4)), pack))
    # Never larger than the sublane-padded row count.
    br = min(br, _round_up(rows, pack))
    return max(pack, (br // pack) * pack)


def rms_norm(x, weight, eps=1e-6, *, block_rows=None, weight_in_input_dtype=False):
    """x: (..., hidden). weight: (hidden,).

    Default output dtype = promote(x.dtype, weight.dtype) (PyTorch semantics).
    With weight_in_input_dtype=True the weight is cast to x.dtype first, so the
    output stays in the activation dtype (bandwidth optimization, opt-in).
    """
    orig_shape = x.shape
    hidden = orig_shape[-1]
    rows = max(1, math.prod(orig_shape[:-1]))

    if weight_in_input_dtype:
        weight = weight.astype(x.dtype)
    out_dtype = jnp.promote_types(x.dtype, weight.dtype)

    in_bytes = jnp.dtype(x.dtype).itemsize
    out_bytes = jnp.dtype(out_dtype).itemsize
    w_bytes = jnp.dtype(weight.dtype).itemsize

    # Sublane packing of the second-minor dim: 8 for f32, 16 for bf16, 32 for int8.
    pack = 8 * max(1, 4 // in_bytes)
    budget_bytes, vmem_limit = _vmem_caps()

    if block_rows is None:
        block_rows = _pick_block_rows(rows, hidden, in_bytes, out_bytes, pack,
                                      budget_bytes)
    block_rows = max(pack, (block_rows // pack) * pack)

    # In-kernel sub-chunking: keep the f32 working set to <= 64 rows at a time.
    sub_target = 64                                  # multiple of 8 / 16 / 32
    if block_rows >= sub_target:
        block_rows = (block_rows // sub_target) * sub_target
        sub_rows = sub_target
    else:
        sub_rows = block_rows

    x2d = x.reshape(rows, hidden)
    w2d = weight.reshape(1, hidden)

    grid = (pl.cdiv(rows, block_rows),)

    cost = pl.CostEstimate(
        flops=6 * rows * hidden,          # square, reduce, scale, casts, weight mul
        transcendentals=rows,             # one rsqrt per row
        bytes_accessed=rows * hidden * (in_bytes + out_bytes) + hidden * w_bytes,
    )

    out = pl.pallas_call(
        functools.partial(_rmsnorm_kernel, eps=eps, sub_rows=sub_rows),
        out_shape=jax.ShapeDtypeStruct((rows, hidden), out_dtype),
        grid_spec=pltpu.PrefetchScalarGridSpec(
            num_scalar_prefetch=0,
            grid=grid,
            in_specs=[
                pl.BlockSpec((block_rows, hidden), lambda i: (i, 0)),
                # Constant index_map -> weight tile stays resident across steps.
                pl.BlockSpec((1, hidden), lambda i: (0, 0)),
            ],
            out_specs=pl.BlockSpec((block_rows, hidden), lambda i: (i, 0)),
        ),
        compiler_params=pltpu.CompilerParams(
            dimension_semantics=("parallel",),
            vmem_limit_bytes=vmem_limit,
        ),
        cost_estimate=cost,
    )(x2d, w2d)
    return out.reshape(orig_shape[:-1] + (hidden,))


def rms_norm_ref(x, weight, eps=1e-6):
    """Pure-JAX reference mirroring the PyTorch forward."""
    input_dtype = x.dtype
    xf = x.astype(jnp.float32)
    var = jnp.mean(xf * xf, axis=-1, keepdims=True)
    xf = xf * jax.lax.rsqrt(var + eps)
    return weight * xf.astype(input_dtype)


if __name__ == "__main__":
    key = jax.random.PRNGKey(0)
    k1, k2, k3 = jax.random.split(key, 3)
    hidden = 256

    # Test 1: f32 activations, default (ones) weight like the module init.
    x = jax.random.normal(k1, (2, 8, hidden), dtype=jnp.float32)
    weight = jnp.ones((hidden,), dtype=jnp.float32)
    out = rms_norm(x, weight, eps=1e-6)
    jax.block_until_ready(out)
    ref = rms_norm_ref(x, weight, eps=1e-6)
    assert out.shape == ref.shape and out.dtype == ref.dtype
    assert jnp.allclose(out, ref, atol=1e-5, rtol=1e-5)

    # Test 2: bf16 activations, non-trivial f32 weight, ragged row count
    # (exercises the cdiv grid / partial last block and dtype promotion).
    xb = jax.random.normal(k2, (3, 7, hidden), dtype=jnp.bfloat16)
    wb = (1.0 + 0.1 * jax.random.normal(k3, (hidden,))).astype(jnp.float32)
    outb = rms_norm(xb, wb, eps=1e-6)
    jax.block_until_ready(outb)
    refb = rms_norm_ref(xb, wb, eps=1e-6)
    assert outb.shape == refb.shape and outb.dtype == refb.dtype
    assert jnp.allclose(outb, refb, atol=2e-2, rtol=2e-2)

    # Test 3: bandwidth-saving opt-in path (weight cast to activation dtype,
    # bf16 output) — intentional deviation from torch promotion.
    outc = rms_norm(xb, wb, eps=1e-6, weight_in_input_dtype=True)
    jax.block_until_ready(outc)
    refc = rms_norm_ref(xb, wb.astype(xb.dtype), eps=1e-6)
    assert outc.dtype == jnp.bfloat16 and outc.shape == refc.shape
    assert jnp.allclose(outc.astype(jnp.float32), refc.astype(jnp.float32),
                        atol=3e-2, rtol=3e-2)

    print("KERNEL_OK")
</pallas_src>

<mosaic_0001>
module attributes {stable_mosaic.version = 11 : i64} {
  func.func @_rmsnorm_kernel(%arg0: i32, %arg1: memref<8x256xf32, #tpu.memory_space<vmem>>, %arg2: memref<1x256xf32, #tpu.memory_space<vmem>>, %arg3: memref<8x256xf32, #tpu.memory_space<vmem>>) attributes {dimension_semantics = [#tpu.dimension_semantics<parallel>], iteration_bounds = array<i64: 2>, scalar_prefetch = 0 : i64, scratch_operands = 0 : i64, tpu.core_type = #tpu.core_type<tc>, window_params = [{transform_indices = @transform_0, window_bounds = array<i64: 8, 256>}, {pipeline_mode = #tpu.pipeline_mode<synchronous>, transform_indices = @transform_1, window_bounds = array<i64: 1, 256>}, {transform_indices = @transform_2, window_bounds = array<i64: 8, 256>}]} {
    %c0 = arith.constant 0 : index
    %c0_0 = arith.constant 0 : index
    %0 = vector.load %arg2[%c0, %c0_0] : memref<1x256xf32, #tpu.memory_space<vmem>>, vector<1x256xf32>
    %c0_i32 = arith.constant 0 : i32
    %c8_i32 = arith.constant 8 : i32
    %1 = arith.muli %c0_i32, %c8_i32 : i32
    %2 = tpu.assume_multiple %1, 8 : i32
    %3 = arith.index_cast %2 : i32 to index
    %c0_1 = arith.constant 0 : index
    %4 = vector.load %arg1[%3, %c0_1] : memref<8x256xf32, #tpu.memory_space<vmem>>, vector<8x256xf32>
    %5 = arith.mulf %4, %4 : vector<8x256xf32>
    %cst = arith.constant dense<0.000000e+00> : vector<8xf32>
    %6 = vector.multi_reduction <add>, %5, %cst [1] : vector<8x256xf32> to vector<8xf32>
    %7 = vector.shape_cast %6 : vector<8xf32> to vector<8x1xf32>
    %cst_2 = arith.constant 2.560000e+02 : f32
    %8 = vector.broadcast %cst_2 : f32 to vector<8x1xf32>
    %9 = arith.divf %7, %8 : vector<8x1xf32>
    %cst_3 = arith.constant 9.99999997E-7 : f32
    %10 = vector.broadcast %cst_3 : f32 to vector<8x1xf32>
    %11 = arith.addf %9, %10 : vector<8x1xf32>
    %12 = math.rsqrt %11 : vector<8x1xf32>
    %13 = vector.broadcast %12 : vector<8x1xf32> to vector<8x256xf32>
    %14 = arith.mulf %4, %13 : vector<8x256xf32>
    %15 = vector.broadcast %0 : vector<1x256xf32> to vector<8x256xf32>
    %16 = arith.mulf %15, %14 : vector<8x256xf32>
    %17 = arith.index_cast %2 : i32 to index
    %c0_4 = arith.constant 0 : index
    %18 = vector.load %arg3[%17, %c0_4] : memref<8x256xf32, #tpu.memory_space<vmem>>, vector<8x256xf32>
    tpu.vector_store %arg3[%17, %c0_4], %16 {strides = array<i32>} : memref<8x256xf32, #tpu.memory_space<vmem>>, vector<8x256xf32>,
    %c1_i32 = arith.constant 1 : i32
    return
  }
  func.func @transform_0(%arg0: i32) -> (i32, i32) {
    %c0_i32 = arith.constant 0 : i32
    %c0_i32_0 = arith.constant 0 : i32
    return %arg0, %c0_i32 : i32, i32
  }
  func.func @transform_1(%arg0: i32) -> (i32, i32) {
    %c0_i32 = arith.constant 0 : i32
    %c0_i32_0 = arith.constant 0 : i32
    %c0_i32_1 = arith.constant 0 : i32
    return %c0_i32, %c0_i32_0 : i32, i32
  }
  func.func @transform_2(%arg0: i32) -> (i32, i32) {
    %c0_i32 = arith.constant 0 : i32
    %c0_i32_0 = arith.constant 0 : i32
    return %arg0, %c0_i32 : i32, i32
  }
}

</mosaic_0001>

<bundles_post_ra>
// kernel: tpu_custom_call.1
= control target key start
LH: loop header
LB: loop body
LE: loop exit
PB: predicated region body
PF: predicated region fallthrough
CT: control target
= control target key end

     0   :  { %7 = vsyncpa [#allocation3], 0  ;;  %s622_s0 = inlined_call_operand.hbm [shape: f32[16,256], index: 0, kind: input, shape index: {}]   ;;  %s623_s1 = inlined_call_operand.vmem [shape: f32[1,256], index: 1, kind: input, shape index: {}]   ;;  %s624_s2 = inlined_call_operand.hbm [shape: f32[16,256], index: 2, kind: output, shape index: {}]  }
   0x1   :  { %9 = vsyncpa [#allocation3 + $0x1], 0 }
   0x2   :  { %10 = vsyncpa [#allocation4], 0 }
   0x3   :  { %12 = vsyncpa [#allocation4 + $0x1], 0  ;;  %s458_s9 = smov 0   ;;  %s460_s10 = smov 0  }
   0x4   :  { %s462_s11 = smov 0   ;;  %s464_s12 = smov 0  }
   0x5 LB: > { %s479_s13 = sadd.s32 4294967295, %s439_s12   ;;  %s279_s14 = sadd.s32 4294967294, %s439_s12   ;;  %s439_s12 = sphi %s464_s12, %s639_s12   ;;  %s435_s11 = sphi %s462_s11, %s638_s11   ;;  %s431_s10 = sphi %s460_s10, %s637_s10   ;;  %s427_s9 = sphi %s458_s9, %s636_s9  }
   0x6   : > { %s483_s15 = sadd.s32 1, %s439_s12   ;;  %s25_s16 = sadd.s32 1, %s435_s11 }
   0x7   : > { %s22_s17 = ssub.s32 %s439_s12, %s483_s15  ;;  %p32_p0 = scmp.ne.s32.totalorder %s435_s11, %s431_s10 }
   0x8   : > { %p23_p1 = scmp.eq.s32.totalorder %s22_s17, 0  ;;  %p33_p2 = scmp.eq.s32.totalorder %s439_s12, 0 }
   0x9   : > { %p38_p3 = scmp.ne.s32.totalorder %s431_s10, %s427_s9  ;;  %p39_p4 = scmp.eq.s32.totalorder %s479_s13, 0 }
   0xa   : > { %s495_s18 = scalar_select %p23_p1, %s435_s11, %s25_s16  }
   0xb   : > { %p497_p5 = por %p33_p2, %p32_p0  ;;  %p501_p6 = por %p39_p4, %p38_p3 }
   0xc   : > { %p83_p7 = scmp.eq.s32.totalorder %s479_s13, 1  ;;  %p89_p8 = scmp.eq.s32.totalorder %s279_s14, 1 }
   0xd   : > { %p307_p10 = scmp.lt.s32.totalorder %s439_s12, 2  ;;  %s112_s23 = sand.u32 1, %s435_s11  }
   0xe   : > { %p508_p11 = por %p83_p7, %p32_p0  ;;  %p512_p12 = por %p89_p8, %p38_p3 }
   0xf   : > { %s293_s24 = sshll.u32 %s439_s12, 8  ;;  %s282_s25 = sshll.u32 %s112_s23, 4 }
  0x10   : > { %s628_s21 = scalar_select %p508_p11, 1, 0 }
  0x11   : > { %s629_s22 = scalar_select %p512_p12, 1, 0 }
  0x12   : > { %s521_s28 = scalar_lea.hbm %s622_s0, %s293_s24  ;;  %s116_s29 = scalar_lea.vmem [#allocation2], %s282_s25 }
  0x13   : > { %s124_s30 = sshll.u32 %s116_s29, 4  ;;  %p525_p13 = pnand %p307_p10, %p497_p5  ;;  %s529_s30 = int_to_ptr.vmem [resolvable:$true] %s124_s30 }
  0x14   : > { %s113_s4 = scalar_lea.sflag [#allocation3], %s112_s23  ;;  %s343_s5 = scalar_lea.hbm %s521_s28, 256 }
  0x15   : > { %p344_p2 = scmp.ne.s32.totalorder %s521_s28, %s343_s5  ;;  %p345_p3 = pneg %p525_p13 }
  0x16   : > { %s348_s8 = scalar_lea.hbm %s622_s0, 512  ;;  %p349_p5 = scmp.lt.u32.totalorder %s521_s28, %s622_s0 }
  0x17   : > { %p346_p4 = pnand %p345_p3, %p344_p2  ;;  %p350_p8 = scmp.lt.u32.totalorder %s348_s8, %s343_s5 }
  0x18   : > { %p352_p9 = scmp.lt.u32.totalorder %s343_s5, %s521_s28 }
  0x19   : > { %p347_p7 = pneg %p346_p4  ;;  %p351_p10 = por %p350_p8, %p349_p5 }
  0x1b   : > { %p353_p0 = por %p352_p9, %p351_p10 }
  0x1d   : > { %p354_p1 = pnand %p353_p0, %p347_p7 }
  0x1f   : > { %357 = shalt.err (!%p354_p1)
}
  0x20   : > { %s358_s17 = scalar_lea.vmem %s529_s30, 256  ;;  %s441_s19 = smov [#allocation2]  }
  0x21   : > { %p359_p2 = scmp.ne.s32.totalorder %s529_s30, %s358_s17  ;;  %s363_s23 = sshll.u32 %s441_s19, 4  ;;  %s364_s23 = int_to_ptr.vmem [resolvable:$false] %s363_s23 }
  0x22   : > { %s365_s24 = scalar_lea.vmem %s364_s23, 512  ;;  %p366_p11 = scmp.lt.s32.totalorder %s529_s30, %s364_s23 }
  0x23   : > { %p361_p4 = pnand %p359_p2, %p345_p3  ;;  %p367_p5 = scmp.lt.s32.totalorder %s365_s24, %s358_s17 }
  0x25   : > { %p362_p12 = pneg %p361_p4  ;;  %p368_p8 = por %p367_p5, %p366_p11 }
  0x27   : > { %p369_p9 = pnand %p368_p8, %p362_p12 }
  0x29   : > { %372 = shalt.err (!%p369_p9)
}
  0x2a   : > { %302 = dma.hbm_to_vmem [thread:$0]  (!%p525_p13), %s521_s28, 256, %s529_s30, %s113_s4  }
  0x2b   : > { %p631_p0 = scmp.lt.s32.totalorder %s439_s12, 3  ;;  %p632_p1 = scmp.ge.s32.totalorder %s439_s12, 1 }
  0x2d   : > { %p130_p3 = pnand %p632_p1, %p631_p0 }
  0x2e   : > { %s563_s25 = sand.u32 (!%p130_p3), 1, %s431_s10  }
  0x2f   : > { %133 = sbr.rel (%p130_p3) target bundleno = 235 (0xeb), region = 28  ;;  %s286_s26 = sshll.u32 (!%p130_p3), %s563_s25, 4 }
  0x30   : > { %s136_s27 = scalar_lea.sflag (!%p130_p3), [#allocation3], %s563_s25  ;;  %s139_s29 = scalar_lea.vmem (!%p130_p3), [#allocation2], %s286_s26 }
  0x36   : > { %418 = dma.done.wait (%p501_p6), %s136_s27, 256  }
  0x37   : > { %420 = vsyncadd (%p501_p6), %s136_s27, 4294967040  ;;  %v164_v0 = vld [vmem:[%s139_s29] sm:$0xff]  ;;  %v165_v1 = vld [vmem:[%s139_s29 + $0x8] sm:$0xff]  ;;  %v178_v7 = vlaneseq  ;;  %s294_s20 = sshll.u32 %s479_s13, 8  ;;  %s159_s3 = scalar_lea.vmem [#allocation5], %s286_s26 }
  0x38   : > { %v166_v2 = vmul.f32 %v164_v0, %v164_v0  ;;  %v167_v3 = vmul.f32 %v165_v1, %v165_v1  ;;  %v160_v12 = vld [vmem:[%s623_s1] sm:$0x3]  ;;  %s209_s4 = sshll.u32 %s159_s3, 4  ;;  %s578_s7 = scalar_lea.hbm %s624_s2, %s294_s20  ;;  %s580_s4 = int_to_ptr.vmem [resolvable:$true] %s209_s4 }
  0x39   : > { %v179_v9 = vshrl.u32 %v178_v7, 7  ;;  %s195_s8 = scalar_lea.sflag [#allocation4], %s563_s25  ;;  %s373_s13 = scalar_lea.vmem %s580_s4, 256 }
  0x3a   : > { %v168_v4 = vadd.f32 %v167_v3, %v166_v2  ;;  %p374_p6 = scmp.ne.s32.totalorder %s580_s4, %s373_s13  ;;  %p633_p11 = scmp.ne.s32.totalorder %s628_s21, 0 }
  0x3b   : > { %v180_v10 = vsub.s32 0, %v179_v9  ;;  %v184_v11 = vsub.s32 1, %v179_v9  ;;  %s442_s14 = smov [#allocation5]  }
  0x3c   : > { %169 = vadd.xlane.f32.xlu0 %v168_v4  ;;  %p375_p12 = pnand %p374_p6, %p633_p11  ;;  %s377_s16 = sshll.u32 %s442_s14, 4  ;;  %s378_s16 = int_to_ptr.vmem [resolvable:$false] %s377_s16 }
  0x3d   : > { %v181_v13 = vrot.slane %v160_v12, %v180_v10  ;;  %v185_v14 = vrot.slane %v160_v12, %v184_v11  ;;  %s379_s17 = scalar_lea.vmem %s378_s16, 512  ;;  %p380_p7 = scmp.lt.s32.totalorder %s580_s4, %s378_s16 }
  0x3e   : > { %p376_p13 = pneg %p375_p12  ;;  %p381_p10 = scmp.lt.s32.totalorder %s379_s17, %s373_s13 }
  0x40   : > { %p382_p2 = por %p381_p10, %p380_p7 }
  0x42   : > { %p383_p4 = pnand %p382_p2, %p376_p13 }
  0xc9   : > { %v170_v5 = vpop.xlane.xlu0 %169 }
  0xca   : > { %v172_v6 = vmul.f32 0.00390625, %v170_v5 }
  0xcc   : > { %v173_v8 = vadd.f32 1e-06, %v172_v6 }
  0xce   : > { %341 = vrsqrt.f32 %v173_v8 }
  0xd8   : > { %v342_v15 = vpop.eup %341 }
  0xd9   : > { %v175_v16 = vmul.f32 %v342_v15, %v164_v0  ;;  %v176_v17 = vmul.f32 %v342_v15, %v165_v1 }
  0xdb   : > { %v188_v18 = vmul.f32 %v181_v13, %v175_v16  ;;  %v189_v19 = vmul.f32 %v185_v14, %v176_v17 }
  0xdd   : > { %192 = vst [vmem:[%s159_s3] sm:$0xff] %v188_v18  ;;  %193 = vst [vmem:[%s159_s3 + $0x8] sm:$0xff] %v189_v19 }
  0xde   : > { %386 = shalt.err (!%p383_p4)
}
  0xdf   : > { %s387_s19 = scalar_lea.hbm %s578_s7, 256  ;;  %s391_s25 = scalar_lea.hbm %s624_s2, 512 }
  0xe0   : > { %p388_p5 = scmp.ne.s32.totalorder %s578_s7, %s387_s19  ;;  %p392_p0 = scmp.lt.u32.totalorder %s578_s7, %s624_s2 }
  0xe1   : > { %p393_p1 = scmp.lt.u32.totalorder %s391_s25, %s387_s19  ;;  %p395_p6 = scmp.lt.u32.totalorder %s387_s19, %s578_s7 }
  0xe2   : > { %p389_p8 = pnand %p388_p5, %p633_p11 }
  0xe3   : > { %p394_p3 = por %p393_p1, %p392_p0 }
  0xe4   : > { %p390_p9 = pneg %p389_p8 }
  0xe5   : > { %p396_p12 = por %p395_p6, %p394_p3 }
  0xe7   : > { %p397_p13 = pnand %p396_p12, %p390_p9 }
  0xe9   : > { %400 = shalt.err (!%p397_p13)
}
  0xea   : > { %297 = dma.vmem_to_hbm [thread:$0]  (%p633_p11), %s580_s4, 256, %s578_s7, %s195_s8  }
  0xeb PF: > { %s221_s29 = sand.u32 1, %s427_s9   ;;  %p634_p7 = scmp.ne.s32.totalorder %s629_s22, 0 }
  0xec   : > { %p635_p10 = scmp.ge.s32.totalorder %s439_s12, 2  ;;  %s222_s28 = scalar_lea.sflag [#allocation4], %s221_s29 }
  0xee   : > { %p304_p2 = pnand %p635_p10, %p634_p7 }
  0xf0   : > { %422 = dma.done.wait (!%p304_p2), %s222_s28, 256  }
  0xf1   : > { %424 = vsyncadd (!%p304_p2), %s222_s28, 4294967040  ;;  %p15_p4 = scmp.ge.s32.totalorder %s483_s15, 4   ;;  %s636_s9 = smov %s431_s10 }
  0xf2   : > { %s637_s10 = smov %s435_s11  ;;  %s638_s11 = smov %s495_s18 }
  0xf3   : > { %s639_s12 = smov %s483_s15  ;;  %17 = sbr.rel (!%p15_p4) target bundleno = 5 (0x5), region = 75 }
  0xfa   :  { %227 = vsyncpa [#allocation3], 1 }
  0xfb   :  { %229 = vsyncpa [#allocation3 + $0x1], 1 }
  0xfc   :  { %230 = vsyncpa [#allocation4], 1 }
  0xfd   :  { %232 = vsyncpa [#allocation4 + $0x1], 1 }

</bundles_post_ra>
